<compile_context>
chip_gen: v6e
topology: v6e:2x2x1
jax: 0.10.0
libtpu: 0.0.40
codegen_flags: <defaults>
</compile_context>

<pallas_src>
import math
from functools import partial

import jax
import jax.numpy as jnp
from jax import lax
from jax.experimental import pallas as pl
from jax.experimental.pallas import tpu as pltpu

_MASK_NEG = -1e30


# -----------------------------------------------------------------------------
# Tiling / VMEM heuristics
# -----------------------------------------------------------------------------
def _pick_tiles(B, Lq, Lk, row_target=256, prefer_parallel=True):
    # q tile: whole Lq unless it is long; keep Tq % 8 == 0 so the in-kernel
    # (Bt, Tq, D) -> (Bt*Tq, D) row packing is a free retiling.
    Tq = Lq
    if Lq > 512:
        for cand in (512, 256, 128):
            if Lq % cand == 0:
                Tq = cand
                break
    if Tq % 8 != 0 or Lk % 8 != 0:
        return 1, Tq                      # odd shapes: no batch packing
    # batch tile: largest divisor of B packing ~row_target rows per MXU matmul
    Bt = 1
    for d in range(1, B + 1):
        if B % d == 0 and d * Tq <= row_target:
            Bt = d
    # keep >=2 parallel grid steps when possible (v7x has 2 TensorCores fed by
    # sharding "parallel" grid axes); neutral on v5e/v6e.
    if prefer_parallel and B > 1 and (B // Bt) * (Lq // Tq) < 2:
        for d in range(Bt - 1, 0, -1):
            if B % d == 0:
                Bt = d
                break
    return Bt, Tq


def _vmem_limit_bytes(Bt, Tq, Lk, D):
    # double-buffered f32 data blocks + score/acc headroom; clamped to a range
    # safe on v5e/v6e (128 MiB physical) and v7x (64 MiB physical).
    per_step = 4 * (3 * Bt * Tq * D + 2 * Bt * Lk * D + 2 * Bt * Tq * Lk)
    return int(min(56 << 20, max(32 << 20, 3 * per_step)))


# -----------------------------------------------------------------------------
# Fused MHA kernel: one grid step = (batch tile, q tile, head)
# -----------------------------------------------------------------------------
def _mha_kernel(*refs, dk, qkv_mode, mask_mode, q_tile):
    refs = list(refs)
    acc_ref = refs.pop()                  # f32 VMEM scratch (Bt, Tq, D)
    o_ref = refs.pop()                    # output block     (Bt, Tq, D)
    it = iter(refs)

    if qkv_mode == "self":
        x_ref = next(it)
    elif qkv_mode == "kv_shared":
        q_ref, kv_ref = next(it), next(it)
    else:                                 # "separate"
        q_ref, k_ref, v_ref = next(it), next(it), next(it)

    mask_ref = next(it) if mask_mode in ("padding", "dense") else None

    if qkv_mode == "self":
        wqkv_ref, bqkv_ref = next(it), next(it)
    elif qkv_mode == "kv_shared":
        wq_ref, bq_ref, wkv_ref, bkv_ref = next(it), next(it), next(it), next(it)
    else:
        wq_ref, bq_ref = next(it), next(it)
        wk_ref, bk_ref = next(it), next(it)
        wv_ref, bv_ref = next(it), next(it)
    wo_ref, bo_ref = next(it), next(it)

    head = pl.program_id(2)
    bf16, f32 = jnp.bfloat16, jnp.float32

    @pl.when(head == 0)
    def _init():
        acc_ref[...] = jnp.zeros_like(acc_ref)

    def rows(ref):
        # (Bt, L, D) block -> (Bt*L, D) bf16 rows packed for the MXU.
        bt, l, d = ref.shape
        return ref[...].reshape(bt * l, d).astype(bf16), bt, l

    # --- per-head projections (1/sqrt(dk) already folded into the Q weights) -
    if qkv_mode == "self":
        x2, bt, lq = rows(x_ref)
        lk = lq
        qkv = jnp.dot(x2, wqkv_ref[0], preferred_element_type=f32) + bqkv_ref[0]
        qh, kh, vh = qkv[:, :dk], qkv[:, dk:2 * dk], qkv[:, 2 * dk:]
    elif qkv_mode == "kv_shared":
        q2, bt, lq = rows(q_ref)
        kv2, _, lk = rows(kv_ref)
        qh = jnp.dot(q2, wq_ref[0], preferred_element_type=f32) + bq_ref[0]
        kv = jnp.dot(kv2, wkv_ref[0], preferred_element_type=f32) + bkv_ref[0]
        kh, vh = kv[:, :dk], kv[:, dk:]
    else:
        q2, bt, lq = rows(q_ref)
        k2, _, lk = rows(k_ref)
        v2, _, _ = rows(v_ref)
        qh = jnp.dot(q2, wq_ref[0], preferred_element_type=f32) + bq_ref[0]
        kh = jnp.dot(k2, wk_ref[0], preferred_element_type=f32) + bk_ref[0]
        vh = jnp.dot(v2, wv_ref[0], preferred_element_type=f32) + bv_ref[0]

    q3 = qh.reshape(bt, lq, dk).astype(bf16)
    k3 = kh.reshape(bt, lk, dk).astype(bf16)
    v3 = vh.reshape(bt, lk, dk).astype(bf16)

    # --- scores (pre-scaled), mask, softmax ----------------------------------
    s = lax.dot_general(q3, k3, (((2,), (2,)), ((0,), (0,))),
                        preferred_element_type=f32)              # (Bt, Tq, Lk)

    if mask_mode == "causal":
        q_pos = pl.program_id(1) * q_tile + lax.broadcasted_iota(jnp.int32, s.shape, 1)
        k_pos = lax.broadcasted_iota(jnp.int32, s.shape, 2)
        s = jnp.where(q_pos >= k_pos, s, _MASK_NEG)
    elif mask_mode in ("padding", "dense"):
        keep = mask_ref[...].astype(f32)          # (Bt,1,Lk) or (Bt,Tq,Lk), 0/1
        s = jnp.where(keep == 0.0, _MASK_NEG, s)

    s = s - jnp.max(s, axis=-1, keepdims=True)
    p = jnp.exp(s)
    # softmax denominator on the EUP (approx ~1e-3 rel; fine for inference)
    p = p * pl.reciprocal(jnp.sum(p, axis=-1, keepdims=True), approx=True)
    # TODO(synk): attention-prob dropout is identity (eval-mode forward);
    #   training would draw a mask via pltpu.prng_seed / prng_random_bits.

    ctx = lax.dot_general(p.astype(bf16), v3, (((2,), (1,)), ((0,), (0,))),
                          preferred_element_type=f32)            # (Bt, Tq, dk)

    # --- this head's contribution to W_O: out += ctx_h @ W_O[head] -----------
    part = jnp.dot(ctx.reshape(bt * lq, dk).astype(bf16), wo_ref[0],
                   preferred_element_type=f32)                   # (Bt*Tq, D)
    acc_ref[...] += part.reshape(acc_ref.shape)

    @pl.when(head == pl.num_programs(2) - 1)
    def _finalize():
        o_ref[...] = (acc_ref[...] + bo_ref[...]).astype(o_ref.dtype)


# -----------------------------------------------------------------------------
# Mask preparation (compact, never an f32 [B, Lq, Lk])
# -----------------------------------------------------------------------------
def _padding_mask_i8(mask, B, Lk):
    m = jnp.asarray(mask).reshape(B, 1, Lk)       # accepts [B,Lk] or [B,1,1,Lk]
    return (m != 0).astype(jnp.int8)


def _dense_mask_i8(mask, B, Lq, Lk):
    m = jnp.asarray(mask)
    if m.ndim == 4:
        m = m[:, 0]                               # drop broadcast head dim
    if m.ndim == 2:
        m = m[None]
    m = jnp.broadcast_to(m, (B, Lq, Lk))
    return (m != 0).astype(jnp.int8)


# -----------------------------------------------------------------------------
# Wrapper
# -----------------------------------------------------------------------------
def multi_head_attention(params, q, k=None, v=None, *, h, mask=None,
                         mask_mode="none", is_self=False, kv_shared=False,
                         row_target=256, prefer_parallel=True):
    """Forward of the PyTorch MultiHeadAttention module (dropout = identity).

    mask_mode: "none" | "causal" (generated in-kernel) |
               "padding" (mask = [B, Lk] keep row)     |
               "dense"   (mask broadcastable to [B, Lq, Lk]).
    is_self / kv_shared are explicit flags (no `is`-identity dispatch).
    """
    assert mask_mode in ("none", "causal", "padding", "dense")
    if mask_mode in ("padding", "dense"):
        assert mask is not None
    if is_self:
        k = q if k is None else k
        v = q if v is None else v
        kv_shared = True
    assert k is not None and v is not None

    B, Lq, D = q.shape
    Lk = k.shape[1]
    assert D % h == 0
    dk = D // h

    Bt, Tq = _pick_tiles(B, Lq, Lk, row_target, prefer_parallel)
    nb, nq = B // Bt, Lq // Tq

    if is_self and nq == 1:
        qkv_mode = "self"            # fused per-head [D, 3*dk] QKV projection
    elif kv_shared:
        qkv_mode = "kv_shared"       # fused per-head [D, 2*dk] KV projection
    else:
        qkv_mode = "separate"

    q_spec = pl.BlockSpec((Bt, Tq, D), lambda b, qi, hd: (b, qi, 0))
    kv_spec = pl.BlockSpec((Bt, Lk, D), lambda b, qi, hd: (b, 0, 0))

    if qkv_mode == "self":
        data_in, data_specs = [q], [q_spec]
    elif qkv_mode == "kv_shared":
        data_in, data_specs = [q, k], [q_spec, kv_spec]
    else:
        data_in, data_specs = [q, k, v], [q_spec, kv_spec, kv_spec]

    mask_in, mask_specs = [], []
    if mask_mode == "padding":
        mask_in = [_padding_mask_i8(mask, B, Lk)]
        mask_specs = [pl.BlockSpec((Bt, 1, Lk), lambda b, qi, hd: (b, 0, 0))]
    elif mask_mode == "dense":
        mask_in = [_dense_mask_i8(mask, B, Lq, Lk)]
        mask_specs = [pl.BlockSpec((Bt, Tq, Lk), lambda b, qi, hd: (b, qi, 0))]

    def w_spec(n_out):
        return pl.BlockSpec((1, D, n_out), lambda b, qi, hd: (hd, 0, 0))

    def b_spec(n_out):
        return pl.BlockSpec((1, 1, n_out), lambda b, qi, hd: (hd, 0, 0))

    if qkv_mode == "self":
        w_in = [params["wqkv_h"], params["bqkv_h"]]
        w_specs = [w_spec(3 * dk), b_spec(3 * dk)]
    elif qkv_mode == "kv_shared":
        w_in = [params["wq_h"], params["bq_h"], params["wkv_h"], params["bkv_h"]]
        w_specs = [w_spec(dk), b_spec(dk), w_spec(2 * dk), b_spec(2 * dk)]
    else:
        w_in = [params["wq_h"], params["bq_h"], params["wk_h"], params["bk_h"],
                params["wv_h"], params["bv_h"]]
        w_specs = [w_spec(dk), b_spec(dk), w_spec(dk), b_spec(dk),
                   w_spec(dk), b_spec(dk)]
    w_in += [params["wo_h"], params["bo_k"]]
    w_specs += [pl.BlockSpec((1, dk, D), lambda b, qi, hd: (hd, 0, 0)),
                pl.BlockSpec((1, 1, D), lambda b, qi, hd: (0, 0, 0))]

    kernel = partial(_mha_kernel, dk=dk, qkv_mode=qkv_mode,
                     mask_mode=mask_mode, q_tile=Tq)

    return pl.pallas_call(
        kernel,
        out_shape=jax.ShapeDtypeStruct((B, Lq, D), q.dtype),
        grid=(nb, nq, h),
        in_specs=data_specs + mask_specs + w_specs,
        out_specs=pl.BlockSpec((Bt, Tq, D), lambda b, qi, hd: (b, qi, 0)),
        scratch_shapes=[pltpu.VMEM((Bt, Tq, D), jnp.float32)],
        compiler_params=pltpu.CompilerParams(
            dimension_semantics=("parallel", "parallel", "arbitrary"),
            vmem_limit_bytes=_vmem_limit_bytes(Bt, Tq, Lk, D)),
    )(*data_in, *mask_in, *w_in)


# -----------------------------------------------------------------------------
# Parameter init: head-major bf16 weights, f32 biases, 1/sqrt(dk) folded into Q
# -----------------------------------------------------------------------------
def init_mha_params(key, d_model, h, param_dtype=jnp.bfloat16):
    assert d_model % h == 0
    dk = d_model // h
    ks = jax.random.split(key, 8)

    def lin(kw, kb, fan_in, fan_out):
        w = jax.random.normal(kw, (fan_in, fan_out), jnp.float32) / math.sqrt(fan_in)
        b = jax.random.normal(kb, (fan_out,), jnp.float32) * 0.02
        return w, b

    wq, bq = lin(ks[0], ks[1], d_model, d_model)
    wk, bk = lin(ks[2], ks[3], d_model, d_model)
    wv, bv = lin(ks[4], ks[5], d_model, d_model)
    wo, bo = lin(ks[6], ks[7], d_model, d_model)

    scale = 1.0 / math.sqrt(dk)          # folded into the Q projection

    def head_major(w):                   # [D, D] -> [h, D, dk]
        return jnp.transpose(w.reshape(d_model, h, dk), (1, 0, 2))

    wq_h, wk_h, wv_h = head_major(wq * scale), head_major(wk), head_major(wv)
    bq_h, bk_h, bv_h = (bq * scale).reshape(h, 1, dk), bk.reshape(h, 1, dk), bv.reshape(h, 1, dk)
    wo_h = wo.reshape(h, dk, d_model)    # [h, dk, D]

    return {
        # kernel params: weights bf16 (MXU inputs), biases f32
        "wq_h": wq_h.astype(param_dtype), "bq_h": bq_h,
        "wk_h": wk_h.astype(param_dtype), "bk_h": bk_h,
        "wv_h": wv_h.astype(param_dtype), "bv_h": bv_h,
        "wqkv_h": jnp.concatenate([wq_h, wk_h, wv_h], -1).astype(param_dtype),
        "bqkv_h": jnp.concatenate([bq_h, bk_h, bv_h], -1),
        "wkv_h": jnp.concatenate([wk_h, wv_h], -1).astype(param_dtype),
        "bkv_h": jnp.concatenate([bk_h, bv_h], -1),
        "wo_h": wo_h.astype(param_dtype), "bo_k": bo.reshape(1, 1, d_model),
        # plain-layout f32 copies for the pure-JAX reference
        "wq": wq, "bq": bq, "wk": wk, "bk": bk, "wv": wv, "bv": bv,
        "wo": wo, "bo": bo,
    }


# -----------------------------------------------------------------------------
# Pure-JAX reference (PyTorch forward; mirrors the kernel's bf16 rounding so
# the comparison isolates kernel logic; -1e30 stands in for -inf)
# -----------------------------------------------------------------------------
def mha_reference(params, q, k, v, mask4, *, h):
    B, Lq, D = q.shape
    Lk = k.shape[1]
    dk = D // h
    f32 = jnp.float32
    rnd = lambda a: a.astype(jnp.bfloat16).astype(f32)
    Q = rnd(q) @ rnd(params["wq"]) + params["bq"]
    K = rnd(k) @ rnd(params["wk"]) + params["bk"]
    V = rnd(v) @ rnd(params["wv"]) + params["bv"]
    Q = Q.reshape(B, Lq, h, dk).transpose(0, 2, 1, 3)
    K = K.reshape(B, Lk, h, dk).transpose(0, 2, 1, 3)
    V = V.reshape(B, Lk, h, dk).transpose(0, 2, 1, 3)
    s = jnp.einsum("bhqd,bhkd->bhqk", rnd(Q), rnd(K)) / math.sqrt(dk)
    if mask4 is not None:
        s = jnp.where(mask4 == 0, _MASK_NEG, s)
    a = jax.nn.softmax(s, axis=-1)
    ctx = jnp.einsum("bhqk,bhkd->bhqd", rnd(a), rnd(V))
    ctx = ctx.transpose(0, 2, 1, 3).reshape(B, Lq, D)
    return rnd(ctx) @ rnd(params["wo"]) + params["bo"]


# -----------------------------------------------------------------------------
if __name__ == "__main__":
    B, Lq, Lk, d_model, h = 2, 8, 16, 128, 8          # d_k = 16

    key = jax.random.PRNGKey(0)
    kp, kx, km = jax.random.split(key, 3)
    params = init_mha_params(kp, d_model, h)

    x = jax.random.normal(kx, (B, Lq, d_model), jnp.float32)
    mem = jax.random.normal(km, (B, Lk, d_model), jnp.float32)

    # 1) self-attention, causal mask generated in-kernel (zero mask HBM traffic)
    out_self = jax.block_until_ready(
        multi_head_attention(params, x, is_self=True, mask_mode="causal", h=h))
    causal4 = jnp.tril(jnp.ones((Lq, Lq), jnp.float32))[None, None]
    ref_self = mha_reference(params, x, x, x, causal4, h=h)

    # 2) cross-attention over shared K/V memory, compact [B, Lk] padding mask
    keep = (jnp.arange(Lk)[None, :] < jnp.array([Lk, Lk - 5])[:, None]
            ).astype(jnp.float32)
    out_cross = jax.block_until_ready(
        multi_head_attention(params, x, mem, mem, mask=keep,
                             mask_mode="padding", kv_shared=True, h=h))
    ref_cross = mha_reference(params, x, mem, mem, keep[:, None, None, :], h=h)

    # 3) fully general path: separate q/k/v, dense int8 mask, batch-packed rows
    #    (prefer_parallel=False -> Bt=2, so projections see 16-row matmuls)
    dense = jnp.broadcast_to(jnp.tril(jnp.ones((Lq, Lq), jnp.float32))[None],
                             (B, Lq, Lq))
    out_dense = jax.block_until_ready(
        multi_head_attention(params, x, x, x, mask=dense, mask_mode="dense",
                             h=h, prefer_parallel=False))

    assert out_self.shape == (B, Lq, d_model)
    assert out_cross.shape == (B, Lq, d_model)
    for o in (out_self, out_cross, out_dense):
        assert bool(jnp.all(jnp.isfinite(o)))
    assert bool(jnp.allclose(out_self, ref_self, atol=1e-2, rtol=1e-2))
    assert bool(jnp.allclose(out_cross, ref_cross, atol=1e-2, rtol=1e-2))
    # dense causal mask through the general path must match the fused causal path
    assert bool(jnp.allclose(out_dense, ref_self, atol=1e-2, rtol=1e-2))
    print("KERNEL_OK")
</pallas_src>

<mosaic_0001>
module attributes {stable_mosaic.version = 11 : i64} {
  func.func @_mha_kernel(%arg0: i32, %arg1: i32, %arg2: i32, %arg3: memref<1x8x128xf32, #tpu.memory_space<vmem>>, %arg4: memref<1x128x48xbf16, #tpu.memory_space<vmem>>, %arg5: memref<1x1x48xf32, #tpu.memory_space<vmem>>, %arg6: memref<1x16x128xbf16, #tpu.memory_space<vmem>>, %arg7: memref<1x1x128xf32, #tpu.memory_space<vmem>>, %arg8: memref<1x8x128xf32, #tpu.memory_space<vmem>>, %arg9: memref<1x8x128xf32, #tpu.memory_space<vmem>>) attributes {dimension_semantics = [#tpu.dimension_semantics<parallel>, #tpu.dimension_semantics<parallel>, #tpu.dimension_semantics<arbitrary>], iteration_bounds = array<i64: 2, 1, 8>, scalar_prefetch = 0 : i64, scratch_operands = 1 : i64, tpu.core_type = #tpu.core_type<tc>, window_params = [{transform_indices = @transform_0, window_bounds = array<i64: 1, 8, 128>}, {transform_indices = @transform_1, window_bounds = array<i64: 1, 128, 48>}, {transform_indices = @transform_2, window_bounds = array<i64: 1, 1, 48>}, {transform_indices = @transform_3, window_bounds = array<i64: 1, 16, 128>}, {pipeline_mode = #tpu.pipeline_mode<synchronous>, transform_indices = @transform_4, window_bounds = array<i64: 1, 1, 128>}, {transform_indices = @transform_5, window_bounds = array<i64: 1, 8, 128>}]} {
    %c0_i32 = arith.constant 0 : i32
    %0 = arith.cmpi eq, %arg2, %c0_i32 : i32
    %1 = arith.extui %0 : i1 to i32
    %c0_i32_0 = arith.constant 0 : i32
    %2 = arith.cmpi ne, %1, %c0_i32_0 : i32
    scf.if %2 {
      %cst_25 = arith.constant 0.000000e+00 : f32
      %55 = vector.broadcast %cst_25 : f32 to vector<1x8x128xf32>
      %c0_26 = arith.constant 0 : index
      %c0_27 = arith.constant 0 : index
      %c0_28 = arith.constant 0 : index
      %56 = vector.load %arg9[%c0_26, %c0_27, %c0_28] : memref<1x8x128xf32, #tpu.memory_space<vmem>>, vector<1x8x128xf32>
      tpu.vector_store %arg9[%c0_26, %c0_27, %c0_28], %55 {strides = array<i32>} : memref<1x8x128xf32, #tpu.memory_space<vmem>>, vector<1x8x128xf32>,
    } else {
    }
    %c0 = arith.constant 0 : index
    %c0_1 = arith.constant 0 : index
    %c0_2 = arith.constant 0 : index
    %3 = vector.load %arg3[%c0, %c0_1, %c0_2] : memref<1x8x128xf32, #tpu.memory_space<vmem>>, vector<1x8x128xf32>
    %4 = vector.shape_cast %3 : vector<1x8x128xf32> to vector<8x128xf32>
    %5 = arith.truncf %4 : vector<8x128xf32> to vector<8x128xbf16>
    %c0_3 = arith.constant 0 : index
    %c0_4 = arith.constant 0 : index
    %c0_5 = arith.constant 0 : index
    %6 = vector.load %arg4[%c0_3, %c0_4, %c0_5] : memref<1x128x48xbf16, #tpu.memory_space<vmem>>, vector<1x128x48xbf16>
    %7 = vector.shape_cast %6 : vector<1x128x48xbf16> to vector<128x48xbf16>
    %cst = arith.constant dense<0.000000e+00> : vector<8x48xf32>
    %8 = tpu.matmul %5, %7, %cst {dimension_numbers = #tpu.dot_dimension_numbers<[1], [0], [0], [1], [0, 0, 1, 1], [], []>} : vector<8x128xbf16>, vector<128x48xbf16>, vector<8x48xf32> -> vector<8x48xf32>
    %c0_6 = arith.constant 0 : index
    %c0_7 = arith.constant 0 : index
    %c0_8 = arith.constant 0 : index
    %9 = vector.load %arg5[%c0_6, %c0_7, %c0_8] : memref<1x1x48xf32, #tpu.memory_space<vmem>>, vector<1x1x48xf32>
    %10 = vector.shape_cast %9 : vector<1x1x48xf32> to vector<1x48xf32>
    %11 = vector.broadcast %10 : vector<1x48xf32> to vector<8x48xf32>
    %12 = arith.addf %8, %11 : vector<8x48xf32>
    %13 = vector.extract_strided_slice %12 {offsets = [0, 0], sizes = [8, 16], strides = [1, 1]} : vector<8x48xf32> to vector<8x16xf32>
    %14 = vector.extract_strided_slice %12 {offsets = [0, 16], sizes = [8, 16], strides = [1, 1]} : vector<8x48xf32> to vector<8x16xf32>
    %15 = vector.extract_strided_slice %12 {offsets = [0, 32], sizes = [8, 16], strides = [1, 1]} : vector<8x48xf32> to vector<8x16xf32>
    %16 = vector.shape_cast %13 : vector<8x16xf32> to vector<1x8x16xf32>
    %17 = arith.truncf %16 : vector<1x8x16xf32> to vector<1x8x16xbf16>
    %18 = vector.shape_cast %14 : vector<8x16xf32> to vector<1x8x16xf32>
    %19 = arith.truncf %18 : vector<1x8x16xf32> to vector<1x8x16xbf16>
    %20 = vector.shape_cast %15 : vector<8x16xf32> to vector<1x8x16xf32>
    %21 = arith.truncf %20 : vector<1x8x16xf32> to vector<1x8x16xbf16>
    %cst_9 = arith.constant dense<0.000000e+00> : vector<1x8x8xf32>
    %22 = tpu.matmul %17, %19, %cst_9 {dimension_numbers = #tpu.dot_dimension_numbers<[2], [2], [1], [1], [0, 0, 0, 1, 1, 1], [0], [0]>} : vector<1x8x16xbf16>, vector<1x8x16xbf16>, vector<1x8x8xf32> -> vector<1x8x8xf32>
    %c8_i32 = arith.constant 8 : i32
    %23 = arith.muli %arg1, %c8_i32 : i32
    %24 = tpu.iota {dimensions = array<i32: 1>} : vector<1x8x8xi32>
    %25 = vector.broadcast %23 : i32 to vector<1x8x8xi32>
    %26 = arith.addi %25, %24 : vector<1x8x8xi32>
    %27 = tpu.iota {dimensions = array<i32: 2>} : vector<1x8x8xi32>
    %28 = arith.cmpi sge, %26, %27 : vector<1x8x8xi32>
    %cst_10 = arith.constant -1.000000e+30 : f32
    %29 = vector.broadcast %cst_10 : f32 to vector<1x8x8xf32>
    %30 = arith.select %28, %22, %29 : vector<1x8x8xi1>, vector<1x8x8xf32>
    %cst_11 = arith.constant dense<0xFF800000> : vector<1x8xf32>
    %31 = vector.multi_reduction <maximumf>, %30, %cst_11 [2] : vector<1x8x8xf32> to vector<1x8xf32>
    %32 = vector.shape_cast %31 : vector<1x8xf32> to vector<1x8x1xf32>
    %33 = vector.broadcast %32 : vector<1x8x1xf32> to vector<1x8x8xf32>
    %34 = arith.subf %30, %33 : vector<1x8x8xf32>
    %35 = math.exp %34 : vector<1x8x8xf32>
    %cst_12 = arith.constant dense<0.000000e+00> : vector<1x8xf32>
    %36 = vector.multi_reduction <add>, %35, %cst_12 [2] : vector<1x8x8xf32> to vector<1x8xf32>
    %37 = vector.shape_cast %36 : vector<1x8xf32> to vector<1x8x1xf32>
    %38 = tpu.reciprocal %37 {approx = true} : vector<1x8x1xf32> -> vector<1x8x1xf32>
    %39 = vector.broadcast %38 : vector<1x8x1xf32> to vector<1x8x8xf32>
    %40 = arith.mulf %35, %39 : vector<1x8x8xf32>
    %41 = arith.truncf %40 : vector<1x8x8xf32> to vector<1x8x8xbf16>
    %cst_13 = arith.constant dense<0.000000e+00> : vector<1x8x16xf32>
    %42 = tpu.matmul %41, %21, %cst_13 {dimension_numbers = #tpu.dot_dimension_numbers<[2], [1], [1], [2], [0, 0, 0, 1, 1, 2], [0], [0]>} : vector<1x8x8xbf16>, vector<1x8x16xbf16>, vector<1x8x16xf32> -> vector<1x8x16xf32>
    %43 = vector.shape_cast %42 : vector<1x8x16xf32> to vector<8x16xf32>
    %44 = arith.truncf %43 : vector<8x16xf32> to vector<8x16xbf16>
    %c0_14 = arith.constant 0 : index
    %c0_15 = arith.constant 0 : index
    %c0_16 = arith.constant 0 : index
    %45 = vector.load %arg6[%c0_14, %c0_15, %c0_16] : memref<1x16x128xbf16, #tpu.memory_space<vmem>>, vector<1x16x128xbf16>
    %46 = vector.shape_cast %45 : vector<1x16x128xbf16> to vector<16x128xbf16>
    %cst_17 = arith.constant dense<0.000000e+00> : vector<8x128xf32>
    %47 = tpu.matmul %44, %46, %cst_17 {dimension_numbers = #tpu.dot_dimension_numbers<[1], [0], [0], [1], [0, 0, 1, 1], [], []>} : vector<8x16xbf16>, vector<16x128xbf16>, vector<8x128xf32> -> vector<8x128xf32>
    %c0_18 = arith.constant 0 : index
    %c0_19 = arith.constant 0 : index
    %c0_20 = arith.constant 0 : index
    %48 = vector.load %arg9[%c0_18, %c0_19, %c0_20] : memref<1x8x128xf32, #tpu.memory_space<vmem>>, vector<1x8x128xf32>
    %49 = vector.shape_cast %47 : vector<8x128xf32> to vector<1x8x128xf32>
    %50 = arith.addf %48, %49 : vector<1x8x128xf32>
    %c0_21 = arith.constant 0 : index
    %c0_22 = arith.constant 0 : index
    %c0_23 = arith.constant 0 : index
    %51 = vector.load %arg9[%c0_21, %c0_22, %c0_23] : memref<1x8x128xf32, #tpu.memory_space<vmem>>, vector<1x8x128xf32>
    tpu.vector_store %arg9[%c0_21, %c0_22, %c0_23], %50 {strides = array<i32>} : memref<1x8x128xf32, #tpu.memory_space<vmem>>, vector<1x8x128xf32>,
    %c7_i32 = arith.constant 7 : i32
    %52 = arith.cmpi eq, %arg2, %c7_i32 : i32
    %53 = arith.extui %52 : i1 to i32
    %c0_i32_24 = arith.constant 0 : i32
    %54 = arith.cmpi ne, %53, %c0_i32_24 : i32
    scf.if %54 {
      %c0_25 = arith.constant 0 : index
      %c0_26 = arith.constant 0 : index
      %c0_27 = arith.constant 0 : index
      %55 = vector.load %arg9[%c0_25, %c0_26, %c0_27] : memref<1x8x128xf32, #tpu.memory_space<vmem>>, vector<1x8x128xf32>
      %c0_28 = arith.constant 0 : index
      %c0_29 = arith.constant 0 : index
      %c0_30 = arith.constant 0 : index
      %56 = vector.load %arg7[%c0_28, %c0_29, %c0_30] : memref<1x1x128xf32, #tpu.memory_space<vmem>>, vector<1x1x128xf32>
      %57 = vector.broadcast %56 : vector<1x1x128xf32> to vector<1x8x128xf32>
      %58 = arith.addf %55, %57 : vector<1x8x128xf32>
      %c0_31 = arith.constant 0 : index
      %c0_32 = arith.constant 0 : index
      %c0_33 = arith.constant 0 : index
      %59 = vector.load %arg8[%c0_31, %c0_32, %c0_33] : memref<1x8x128xf32, #tpu.memory_space<vmem>>, vector<1x8x128xf32>
      tpu.vector_store %arg8[%c0_31, %c0_32, %c0_33], %58 {strides = array<i32>} : memref<1x8x128xf32, #tpu.memory_space<vmem>>, vector<1x8x128xf32>,
    } else {
    }
    return
  }
  func.func @transform_0(%arg0: i32, %arg1: i32, %arg2: i32) -> (i32, i32, i32) {
    %c0_i32 = arith.constant 0 : i32
    %c0_i32_0 = arith.constant 0 : i32
    return %arg0, %arg1, %c0_i32 : i32, i32, i32
  }
  func.func @transform_1(%arg0: i32, %arg1: i32, %arg2: i32) -> (i32, i32, i32) {
    %c0_i32 = arith.constant 0 : i32
    %c0_i32_0 = arith.constant 0 : i32
    %c0_i32_1 = arith.constant 0 : i32
    return %arg2, %c0_i32, %c0_i32_0 : i32, i32, i32
  }
  func.func @transform_2(%arg0: i32, %arg1: i32, %arg2: i32) -> (i32, i32, i32) {
    %c0_i32 = arith.constant 0 : i32
    %c0_i32_0 = arith.constant 0 : i32
    %c0_i32_1 = arith.constant 0 : i32
    return %arg2, %c0_i32, %c0_i32_0 : i32, i32, i32
  }
  func.func @transform_3(%arg0: i32, %arg1: i32, %arg2: i32) -> (i32, i32, i32) {
    %c0_i32 = arith.constant 0 : i32
    %c0_i32_0 = arith.constant 0 : i32
    %c0_i32_1 = arith.constant 0 : i32
    return %arg2, %c0_i32, %c0_i32_0 : i32, i32, i32
  }
  func.func @transform_4(%arg0: i32, %arg1: i32, %arg2: i32) -> (i32, i32, i32) {
    %c0_i32 = arith.constant 0 : i32
    %c0_i32_0 = arith.constant 0 : i32
    %c0_i32_1 = arith.constant 0 : i32
    %c0_i32_2 = arith.constant 0 : i32
    return %c0_i32, %c0_i32_0, %c0_i32_1 : i32, i32, i32
  }
  func.func @transform_5(%arg0: i32, %arg1: i32, %arg2: i32) -> (i32, i32, i32) {
    %c0_i32 = arith.constant 0 : i32
    %c0_i32_0 = arith.constant 0 : i32
    return %arg0, %arg1, %c0_i32 : i32, i32, i32
  }
}

</mosaic_0001>

<bundles_post_ra>
// kernel: tpu_custom_call.1
= control target key start
LH: loop header
LB: loop body
LE: loop exit
PB: predicated region body
PF: predicated region fallthrough
CT: control target
= control target key end

     0   :  { %10 = vsyncpa [#allocation4], 0  ;;  %s1243_s0 = inlined_call_operand.vmem [shape: f32[2,8,128], index: 0, kind: input, shape index: {}]   ;;  %s1244_s1 = inlined_call_operand.vmem [shape: bf16[8,128,48], index: 1, kind: input, shape index: {}]   ;;  %s1245_s2 = inlined_call_operand.vmem [shape: f32[8,1,48], index: 2, kind: input, shape index: {}]   ;;  %s1246_s3 = inlined_call_operand.vmem [shape: bf16[8,16,128], index: 3, kind: input, shape index: {}]   ;;  %s1247_s4 = inlined_call_operand.vmem [shape: f32[1,1,128], index: 4, kind: input, shape index: {}]   ;;  %s1248_s5 = inlined_call_operand.hbm [shape: f32[2,8,128], index: 5, kind: output, shape index: {}]  }
   0x1   :  { %12 = vsyncpa [#allocation4 + $0x1], 0  ;;  %s1046_s18 = smov 0   ;;  %s1048_s19 = smov 0  }
   0x2   :  { %s1050_s20 = smov 0   ;;  %s1052_s21 = smov 0  }
   0x3   :  { %s1054_s22 = smov 0   ;;  %s1056_s23 = smov 0  }
   0x4   :  { %s1058_s24 = smov 0   ;;  %s1060_s25 = smov 0  }
   0x5 LB: > { %1254 = sst [smem:[#allocation6_spill]] %s988_s20  ;;  %s741_s26 = sadd.s32 4294967295, %s1008_s25   ;;  %s1008_s25 = sphi %s1060_s25, %s18_s25   ;;  %s1004_s24 = sphi %s1058_s24, %s1268_s24   ;;  %s1000_s23 = sphi %s1056_s23, %s1267_s23   ;;  %s996_s22 = sphi %s1054_s22, %s1266_s22   ;;  %s992_s21 = sphi %s1052_s21, %s1265_s21   ;;  %s988_s20 = sphi %s1050_s20, %s1264_s20   ;;  %s984_s19 = sphi %s1048_s19, %s1270_s19   ;;  %s980_s18 = sphi %s1046_s18, %s1269_s18  }
   0x6   : > { %1255 = sst [smem:[#allocation7_spill]] %s1000_s23  ;;  %s742_s27 = sadd.s32 4294967294, %s1008_s25  }
   0x7   : > { %1256 = sst [smem:[#allocation8_spill]] %s1004_s24  ;;  %s30_s28 = sadd.s32 1, %s1000_s23 }
   0x8   : > { %p31_p0 = scmp.ge.s32.totalorder %s30_s28, 8  ;;  %s37_s29 = sadd.s32 1, %s1004_s24 }
   0x9   : > { %p183_p1 = scmp.ne.s32.totalorder %s988_s20, %s984_s19  ;;  %p184_p2 = scmp.eq.s32.totalorder %s741_s26, 15 }
   0xa   : > { %s1272_s28 = smov (%p31_p0, %s30_s28), 0  ;;  %s1274_s29 = smov (!%p31_p0, %s37_s29), %s1004_s24 }
   0xb   : > { %1257 = sst [smem:[#allocation9_spill]] %s1272_s28  ;;  %p1095_p3 = por %p184_p2, %p183_p1 }
   0xc   : > { %p189_p4 = scmp.ne.s32.totalorder %s984_s19, %s980_s18  ;;  %p39_p5 = scmp.ge.s32.totalorder %s1274_s29, 2 }
   0xd   : > { %p190_p6 = scmp.eq.s32.totalorder %s742_s27, 15  ;;  %p745_p7 = scmp.ge.s32.totalorder %s1008_s25, 1 }
   0xe   : > { %p243_p8 = scmp.lt.s32.totalorder %s1008_s25, 17  ;;  %s1276_s29 = smov (%p39_p5, %s1274_s29), 0 }
   0xf   : > { %1259 = sst [smem:[#allocation10_spill]] %s1276_s29  ;;  %p1105_p9 = por %p190_p6, %p189_p4 }
  0x10   : > { %p244_p10 = pnand %p745_p7, %p243_p8  ;;  %s168_s7 = ssub.s32 %s1004_s24, %s1276_s29 }
  0x11   : > { %s173_s8 = sadd.s32 1, %s988_s20  ;;  %p171_p11 = scmp.eq.s32.totalorder %s168_s7, 0 }
  0x12   : > { %247 = sbr.rel (%p244_p10) target bundleno = 1318 (0x526), region = 40  ;;  %s1249_s10 = sand.u32 (!%p244_p10), 1, %s984_s19  }
  0x13   : > { %s1113_s9 = scalar_select %p171_p11, %s988_s20, %s173_s8  }
  0x14   : > { %p286_p12 = scmp.lt.s32.totalorder (!%p244_p10), %s996_s22, 1  ;;  %s1119_s11 = sshll.u32 (!%p244_p10), %s1249_s10, 3 }
  0x15   : > { %1261 = sst [smem:[#allocation11_spill]] %s1113_s9  ;;  %p293_p13 = scmp.lt.s32.totalorder (!%p244_p10), %s992_s21, 7 }
  0x16   : > { %s285_s20 = scalar_lea.vmem (!%p244_p10), [#allocation3], %s1119_s11  ;;  %p752_p0 = scmp.ne.s32.totalorder (!%p244_p10), %s992_s21, 0 }
  0x17   : > { %s287_s12 = scalar_select %p286_p12, %s996_s22, 1 }
  0x18   : > { %s1124_s13 = scalar_select %p293_p13, %s992_s21, 7 }
  0x19   : > { %s747_s14 = sshll.u32 %s287_s12, 3  ;;  %310 = sbr.rel (%p752_p0) target bundleno = 32 (0x20), region = 44 }
  0x1a   : > { %s1129_s17 = scalar_lea.vmem %s1243_s0, %s747_s14  ;;  %s772_s26 = sshll.u32 %s1124_s13, 6 }
  0x1b   : > { %s1135_s8 = scalar_lea.vmem %s1244_s1, %s772_s26  ;;  %s300_s28 = scalar_lea.vmem %s1245_s2, %s1124_s13 }
  0x1c   : > { %s773_s24 = sshll.u32 %s1124_s13, 3 }
  0x1d   : > { %s1145_s12 = scalar_lea.vmem %s1246_s3, %s773_s24 }
  0x1e   : > { %v1010_v0 = vmov 0.0  }
  0x1f   : > { %311 = vst [vmem:[#allocation2] sm:$0xff] %v1010_v0 }
  0x20 PF: > { %v903_v1 = vld [vmem:[%s1135_s8 + $0x38] sm:$0xff]   ;;  %v1011_v2 = vmov 0.0   ;;  %v904_v3 = vld [vmem:[%s1135_s8 + $0x30] sm:$0xff]   ;;  %vm1012_vm0 = vmmov 0   ;;  %v905_v4 = vld [vmem:[%s1135_s8 + $0x28] sm:$0xff]   ;;  %s1013_s29 = smov 112   ;;  %v477_v21 = vlaneseq }
  0x21   : > { %789 = vmatprep.subr.bf16.mxu0 %v1011_v2  ;;  %809 = vmatprep.subr.bf16.mxu1 %v1011_v2  ;;  %v906_v5 = vld [vmem:[%s1135_s8 + $0x20] sm:$0xff]   ;;  %v907_v6 = vld [vmem:[%s1135_s8 + $0x18] sm:$0xff]   ;;  %v908_v7 = vld [vmem:[%s1135_s8 + $0x10] sm:$0xff]   ;;  %vm429_vm1 = vcmask 130048   ;;  %vm485_vm3 = vcmask 64512   ;;  %vm503_vm4 = vcmask 1043456  }
  0x22   : > { %790 = vmatpush3.bf16.msra.mxu0 %v903_v1  ;;  %805 = vmatprep.mubr.msk.bf16.mxu0 %vm1012_vm0, %v1011_v2  ;;  %v909_v8 = vld [vmem:[%s1135_s8 + $0x8] sm:$0xff]   ;;  %v910_v9 = vld [vmem:[%s1135_s8] sm:$0xff]   ;;  %v478_v22 = vshrl.u32 %v477_v21, 7  ;;  %v482_v23 = vand.u32 127, %v477_v21  ;;  %p766_p1 = scmp.ne.s32.totalorder %s992_s21, 7 }
  0x23   : > { %791 = vmatprep.subr.bf16.mxu0 %v1011_v2  ;;  %811 = vmatprep.mubr.msk.bf16.mxu1 %vm1012_vm0, %v1011_v2  ;;  %v312_v10 = vld [vmem:[%s1129_s17] sm:$0xff] }
  0x24   : > { %v313_v11 = vpack.c.bf16 %v312_v10, %v312_v10  ;;  %v753_v12 = vld [vmem:[%s300_s28] ss:$0 sm:$0xff]  ;;  %vm483_vm2 = vcmp.ge.s32.totalorder %v478_v22, %v482_v23  ;;  %s1014_s28 = smov 96  }
  0x25   : > { %v911_v40 = vld [vmem:[%s1145_s12] sm:$0xff]  }
  0x26   : > { %792 = vmatpush3.bf16.msra.mxu0 %v904_v3  ;;  %v599_v47 = vld [vmem:[#allocation2] sm:$0xff] }
  0x27   : > { %793 = vmatprep.subr.bf16.mxu0 %v1011_v2 }
  0x2a   : > { %794 = vmatpush3.bf16.msra.mxu0 %v905_v4 }
  0x2b   : > { %795 = vmatprep.subr.bf16.mxu0 %v1011_v2 }
  0x2e   : > { %796 = vmatpush3.bf16.msra.mxu0 %v906_v5 }
  0x2f   : > { %797 = vmatprep.subr.bf16.mxu0 %v1011_v2 }
  0x32   : > { %798 = vmatpush3.bf16.msra.mxu0 %v907_v6 }
  0x33   : > { %799 = vmatprep.subr.bf16.mxu0 %v1011_v2 }
  0x36   : > { %800 = vmatpush3.bf16.msra.mxu0 %v908_v7 }
  0x37   : > { %801 = vmatprep.subr.bf16.mxu0 %v1011_v2 }
  0x3a   : > { %802 = vmatpush3.bf16.msra.mxu0 %v909_v8 }
  0x3b   : > { %803 = vmatprep.subr.bf16.mxu0 %v1011_v2 }
  0x3e   : > { %804 = vmatpush3.bf16.msra.mxu0 %v910_v9 }
  0x41   : > { %806 = vmatmul.mubr.bf16.vlgmr.msra.gmra.mxu0 %v313_v11 }
 0x101   : > { %v419_v13 = vpop.f32.mrf.mxu0 }
 0x102   : > { %v420_v14 = vadd.f32 %v753_v12, %v419_v13 }
 0x103   : > { %v807_v15 = vpop.f32.mrf.mxu0 }
 0x104   : > { %v425_v16 = vpack.c.bf16 %v420_v14, %v420_v14 }
 0x105   : > { %v422_v17 = vpop.f32.mrf.mxu0 }
 0x106   : > { %427 = vrot.lane.b32.xlu0 %v425_v16, %s1013_s29 }
 0x107   : > { %v808_v18 = vpop.f32.mrf.mxu0 }
 0x178   : > { %v428_v19 = vpop.permute.xlu0 %427 }
 0x179   : > { %v434_v20 = vsel %vm429_vm1, %v428_v19, 0 }
 0x17a   : > { %810 = vmatpush3.bf16.xpose.msra.mxu1 %v434_v20 }
 0x17b   : > { %815 = vmatprep.subr.bf16.mxu1 %v1011_v2 }
 0x181   : > { %812 = vmatmul.mubr.msk.bf16.vlgmr.msra.gmra.mxu1 %vm429_vm1, %v425_v16 }
 0x182   : > { %817 = vmatprep.mubr.msk.bf16.mxu1 %vm1012_vm0, %v1011_v2 }
 0x241   : > { %v470_v24 = vpop.f32.mrf.mxu1 }
 0x242   : > { %v484_v25 = vsel %vm483_vm2, %v470_v24, -1e+30 }
 0x243   : > { %v813_v26 = vpop.f32.mrf.mxu1  ;;  %v486_v27 = vsel %vm485_vm3, %v484_v25, -inf }
 0x244   : > { %487 = vmax.xlane.f32.xlu0 %v486_v27 }
 0x245   : > { %v473_v28 = vpop.f32.mrf.mxu1 }
 0x247   : > { %v814_v29 = vpop.f32.mrf.mxu1 }
 0x2cd   : > { %v488_v30 = vpop.xlane.xlu0 %487 }
 0x2ce   : > { %v489_v31 = vsub.f32 %v484_v25, %v488_v30 }
 0x2d0   : > { %v490_v32 = vmul.f32 1.442695, %v489_v31 }
 0x2d2   : > { %912 = vpow2.f32 %v490_v32 }
 0x2df   : > { %v913_v33 = vpop.eup %912 }
 0x2e0   : > { %v492_v34 = vsel %vm485_vm3, %v913_v33, 0.0 }
 0x2e1   : > { %493 = vadd.xlane.f32.xlu1 %v492_v34 }
 0x2f2   : > { %498 = vrot.lane.b32.xlu1 %v425_v16, %s1014_s28 }
 0x36a   : > { %v494_v35 = vpop.xlane.xlu1 %493 }
 0x36b   : > { %914 = vrcp.f32 %v494_v35 }
 0x36e   : > { %v499_v36 = vpop.permute.xlu1 %498 }
 0x36f   : > { %v505_v37 = vsel %vm503_vm4, %v499_v36, 0 }
 0x370   : > { %816 = vmatpush3.bf16.msra.mxu1 %v505_v37 }
 0x371   : > { %821 = vmatprep.subr.bf16.mxu1 %v1011_v2 }
 0x378   : > { %v915_v38 = vpop.eup %914 }
 0x379   : > { %v496_v39 = vmul.f32 %v915_v38, %v913_v33 }
 0x37b   : > { %v497_v41 = vpack.c.bf16 %v496_v39, %v496_v39 }
 0x37d   : > { %818 = vmatmul.mubr.msk.bf16.vlgmr.msra.gmra.mxu1 %vm485_vm3, %v497_v41 }
 0x37e   : > { %822 = vmatpush3.bf16.msra.mxu1 %v911_v40  ;;  %823 = vmatprep.mubr.msk.bf16.mxu1 %vm1012_vm0, %v1011_v2 }
 0x43d   : > { %v541_v42 = vpop.f32.mrf.mxu1 }
 0x43e   : > { %v547_v43 = vpack.c.bf16 %v541_v42, %v541_v42 }
 0x43f   : > { %v819_v44 = vpop.f32.mrf.mxu1 }
 0x440   : > { %824 = vmatmul.mubr.msk.bf16.vlgmr.msra.gmra.mxu1 %vm429_vm1, %v547_v43 }
 0x441   : > { %v544_v45 = vpop.f32.mrf.mxu1 }
 0x443   : > { %v820_v46 = vpop.f32.mrf.mxu1 }
 0x500   : > { %v593_v48 = vpop.f32.mrf.mxu1 }
 0x501   : > { %v600_v49 = vadd.f32 %v599_v47, %v593_v48 }
 0x502   : > { %v825_v50 = vpop.f32.mrf.mxu1  ;;  %605 = sbr.rel (%p766_p1) target bundleno = 1294 (0x50e), region = 48 }
 0x503   : > { %601 = vst [vmem:[#allocation2] sm:$0xff] %v600_v49 }
 0x504   : > { %v596_v51 = vpop.f32.mrf.mxu1 }
 0x506   : > { %v826_v52 = vpop.f32.mrf.mxu1 }
 0x507   : > { %v767_v54 = vld [vmem:[%s1247_s4] ss:$0 sm:$0xff] }
 0x50a   : > { %v606_v53 = vld [vmem:[#allocation2] sm:$0xff] }
 0x50b   : > { %v614_v55 = vadd.f32 %v767_v54, %v606_v53 }
 0x50d   : > { %615 = vst [vmem:[%s285_s20] sm:$0xff] %v614_v55 }
 0x50e PF: > { %s769_s13 = sshll.u32 %s996_s22, 7  ;;  %s631_s16 = sshll.u32 %s285_s20, 4  ;;  %s632_s16 = int_to_ptr.vmem [resolvable:$true] %s631_s16 }
 0x50f   : > { %s629_s21 = scalar_lea.hbm %s1248_s5, %s769_s13  ;;  %s1262_s17 = sand.u32 1, %s984_s19  }
 0x510   : > { %s617_s26 = scalar_lea.sflag [#allocation4], %s1262_s17  ;;  %s916_s27 = scalar_lea.vmem %s632_s16, 128 }
 0x511   : > { %p917_p2 = scmp.ne.s32.totalorder %s632_s16, %s916_s27  ;;  %s1015_s7 = smov [#allocation3]  }
 0x512   : > { %s920_s8 = sshll.u32 %s1015_s7, 4  ;;  %s921_s8 = int_to_ptr.vmem [resolvable:$false] %s920_s8 }
 0x513   : > { %p918_p4 = pnand %p917_p2, %p1095_p3  ;;  %s922_s12 = scalar_lea.vmem %s921_s8, 256 }
 0x514   : > { %p923_p6 = scmp.lt.s32.totalorder %s632_s16, %s921_s8  ;;  %p924_p7 = scmp.lt.s32.totalorder %s922_s12, %s916_s27 }
 0x515   : > { %p919_p5 = pneg %p918_p4 }
 0x516   : > { %p925_p8 = por %p924_p7, %p923_p6 }
 0x518   : > { %p926_p10 = pnand %p925_p8, %p919_p5 }
 0x51a   : > { %929 = shalt.err (!%p926_p10)
}
 0x51b   : > { %s930_s22 = scalar_lea.hbm %s629_s21, 128  ;;  %s934_s23 = scalar_lea.hbm %s1248_s5, 256 }
 0x51c   : > { %p931_p11 = scmp.ne.s32.totalorder %s629_s21, %s930_s22  ;;  %p935_p0 = scmp.lt.s32.totalorder %s629_s21, %s1248_s5 }
 0x51d   : > { %p936_p1 = scmp.lt.s32.totalorder %s934_s23, %s930_s22 }
 0x51e   : > { %p932_p12 = pnand %p931_p11, %p1095_p3 }
 0x51f   : > { %p937_p2 = por %p936_p1, %p935_p0 }
 0x520   : > { %p933_p13 = pneg %p932_p12 }
 0x522   : > { %p938_p4 = pnand %p937_p2, %p933_p13 }
 0x524   : > { %941 = shalt.err (!%p938_p4)
}
 0x525   : > { %827 = dma.vmem_to_hbm [thread:$0]  (%p1095_p3), %s632_s16, 128, %s629_s21, %s617_s26  }
 0x526 PF: > { %p833_p5 = scmp.ge.s32.totalorder %s1008_s25, 2  ;;  %s643_s28 = sand.u32 1, %s980_s18  }
 0x527   : > { %s644_s9 = scalar_lea.sflag [#allocation4], %s643_s28 }
 0x528   : > { %p830_p6 = pnand %p833_p5, %p1105_p9 }
 0x52a   : > { %p831_p7 = pneg %p830_p6 }
 0x52c   : > { %975 = dma.done.wait (%p831_p7), %s644_s9, 128  }
 0x52d   : > { %977 = vsyncadd (%p831_p7), %s644_s9, 4294967168  ;;  %s18_s25 = sadd.s32 1, %s1008_s25   ;;  %s1263_s10 = sld [smem:[#allocation6_spill]] }
 0x52e   : > { %p15_p8 = scmp.ge.s32.totalorder %s18_s25, 18   ;;  %s1264_s20 = sld [smem:[#allocation11_spill]] }
 0x52f   : > { %s1265_s21 = sld [smem:[#allocation7_spill]]  ;;  %s1269_s18 = smov %s984_s19 }
 0x530   : > { %s1266_s22 = sld [smem:[#allocation8_spill]]  ;;  %17 = sbr.rel (!%p15_p8) target bundleno = 5 (0x5), region = 92 }
 0x531   : > { %s1267_s23 = sld [smem:[#allocation9_spill]] }
 0x532   : > { %s1268_s24 = sld [smem:[#allocation10_spill]] }
 0x533   : > { %s1270_s19 = smov %s1263_s10 }
 0x535   :  { %649 = vsyncpa [#allocation4], 1 }
 0x536   :  { %651 = vsyncpa [#allocation4 + $0x1], 1 }

</bundles_post_ra>
